<compile_context>
chip_gen: v6e
topology: v6e:2x2x1
jax: 0.10.0
libtpu: 0.0.40
codegen_flags: <defaults>
</compile_context>

<pallas_src>
import jax
import jax.numpy as jnp
from jax.experimental import pallas as pl
from jax.experimental.pallas import tpu as pltpu

C = 256            # intermediate_ch
NFREQ = 10
MAXFREQ = 10.0
T_FULL = 22050     # hard-coded in ANeRF.forward (self.times buffer)
TT = 2048          # time tile; v6e/v7x sweet spot (v5e may prefer 1024)
EMB_GB = 8         # Embedding: batch rows processed per grid step


# ----------------------------------------------------------------------------
# Positional / time embeddings (tiny sin/cos, plain JAX glue)
# ----------------------------------------------------------------------------
def embed_log(x, num_freqs=NFREQ, max_freq=MAXFREQ):
    # order matches embedding_module_log: [x, sin(x*f0..f9), cos(x*f0..f9)]
    freqs = 2.0 ** jnp.linspace(0.0, max_freq, num_freqs).astype(jnp.float32)
    parts = [x]
    parts += [jnp.sin(x * f) for f in freqs]
    parts += [jnp.cos(x * f) for f in freqs]
    return jnp.concatenate(parts, axis=-1)


# ============================================================================
# (1) Embedding module (the spec): piecewise-linear interpolated lookup
# ============================================================================
def embedding_kernel(idx_ref, dis_ref, tab_ref, out_ref):
    # idx_ref: (B_pad,) int32 in SMEM  — left table row per batch element
    # dis_ref: (B_pad, 2) f32 in SMEM  — [weight_for_left, weight_for_right]
    # tab_ref: (ne+2, S, 128) VMEM     — whole wraparound table, resident
    # out_ref: (EMB_GB, S, 128) VMEM   — lane-dense output rows for this step
    base = pl.program_id(0) * EMB_GB
    for r in range(EMB_GB):                 # static unroll: EMB_GB rows / step
        i = base + r
        li = idx_ref[i]                     # dynamic scalar from SMEM
        wl = dis_ref[i, 0]
        wr = dis_ref[i, 1]
        # in-kernel gather: dynamic leading-dim index into the resident table
        out_ref[r] = tab_ref[li] * wl + tab_ref[li + 1] * wr


def embedding_forward(embeds, ori):
    """Pallas equivalent of Embedding.forward.  embeds: (ne, L, ch), ori: (B,)."""
    ne, L, ch = embeds.shape
    ori = ori.reshape(-1).astype(jnp.float32)
    B = ori.shape[0]

    # cat([embeds[-1:], embeds, embeds[:1]]) — wraparound table (ne+2, L, ch)
    embeds_ext = jnp.concatenate([embeds[-1:], embeds, embeds[:1]], axis=0)

    # searchsorted(arange(-1, ne+1), x, right=False) == ceil(x) + 1 (closed form)
    x = jnp.clip((ori + 1.0) / 2.0 * ne, 0.0, float(ne))        # in [0, ne]
    right_idx = jnp.clip(jnp.ceil(x).astype(jnp.int32) + 1, 1, ne + 1)
    left_idx = right_idx - 1                                     # in [0, ne]
    t_left = left_idx.astype(jnp.float32) - 1.0                  # t_value[left_idx]
    left_dis = jnp.clip(x - t_left, 0.0, 1.0)
    right_dis = jnp.clip((t_left + 1.0) - x, 0.0, 1.0)
    # output = left_embed * right_dis + right_embed * left_dis
    dists = jnp.stack([right_dis, left_dis], axis=1)             # (B, 2) f32

    # vreg-exact layout: flatten (L, ch) onto (S, 128) lanes
    F = L * ch
    S = pl.cdiv(F, 128)
    Fp = S * 128
    tab = embeds_ext.reshape(ne + 2, F)
    if Fp != F:
        tab = jnp.pad(tab, ((0, 0), (0, Fp - F)))
    tab = tab.reshape(ne + 2, S, 128)
    # TODO(synk): for very large (num_embed * L * ch) tables that don't fit
    # VMEM, switch to a manual make_async_copy double-buffered row gather.

    # pad the batch to a multiple of EMB_GB (padded rows index row 0, weight 0)
    nb = pl.cdiv(B, EMB_GB)
    B_pad = nb * EMB_GB
    left_idx_p = jnp.pad(left_idx, (0, B_pad - B))
    dists_p = jnp.pad(dists, ((0, B_pad - B), (0, 0)))

    out = pl.pallas_call(
        embedding_kernel,
        out_shape=jax.ShapeDtypeStruct((B_pad, S, 128), jnp.float32),
        grid=(nb,),
        in_specs=[
            pl.BlockSpec(memory_space=pltpu.MemorySpace.SMEM),       # left_idx
            pl.BlockSpec(memory_space=pltpu.MemorySpace.SMEM),       # dists
            pl.BlockSpec((ne + 2, S, 128), lambda g: (0, 0, 0)),     # table (resident)
        ],
        out_specs=pl.BlockSpec((EMB_GB, S, 128), lambda g: (g, 0, 0)),
        compiler_params=pltpu.CompilerParams(
            dimension_semantics=("parallel",)),
    )(left_idx_p, dists_p, tab)

    return out.reshape(B_pad, Fp)[:B, :F].reshape(B, L, ch)


def embedding_reference(embeds, ori):
    """Pure-JAX transliteration of the PyTorch Embedding.forward."""
    ne, L, ch = embeds.shape
    ori = ori.reshape(-1).astype(jnp.float32)
    embeds_ext = jnp.concatenate([embeds[-1:], embeds, embeds[:1]], axis=0)
    x = (ori + 1.0) / 2.0 * ne
    t_value = jnp.arange(-1, ne + 1)
    right_idx = jnp.searchsorted(t_value, x, side='left')
    left_idx = right_idx - 1
    left_embed = embeds_ext[left_idx]
    right_embed = embeds_ext[right_idx]
    left_dis = jnp.clip(x - t_value[left_idx], 0.0, 1.0)[:, None, None]
    right_dis = jnp.clip(t_value[right_idx] - x, 0.0, 1.0)[:, None, None]
    return left_embed * right_dis + right_embed * left_dis


# ============================================================================
# (2) ANeRF forward (visual=False, relative=False) — improved fused kernel
# ============================================================================
def anerf_kernel(sbias_ref, obias_ref, tproj_ref, wm_ref, bm_ref,
                 wd0_ref, wdr_ref, bdr_ref, embs_ref, wprj_ref, bprj_ref,
                 out_ref):
    sbias = sbias_ref[0]                      # (1, C) f32: src/tgt @ Wq + bq
    obias = obias_ref[0]                      # (1, C) f32: ori @ Wd0[256:] + bd0

    # time projection streamed bf16; upcast before the f32 bias add / ReLU
    h = jnp.maximum(tproj_ref[...].astype(jnp.float32) + sbias, 0.0)   # (TT, C)

    # mix_mlp: 4 x (Linear C->C, ReLU) — bf16 MXU inputs, f32 accumulation.
    for l in range(4):
        h = jnp.dot(h.astype(jnp.bfloat16), wm_ref[l],
                    preferred_element_type=jnp.float32) + bm_ref[l:l + 1, :]
        h = jnp.maximum(h, 0.0)

    # diff_mlp layer 0 is identical for the left/right branches -> hoisted.
    d0 = jnp.dot(h.astype(jnp.bfloat16), wd0_ref[...],
                 preferred_element_type=jnp.float32) + obias
    d0 = jnp.maximum(d0, 0.0)                                          # (TT, C)

    # Left/right stacked as a 3-D (2, TT, C) activation.  All per-branch adds
    # are pure broadcasts against the pre-stacked (4, 2, 1, C) embeds; the
    # matmuls run on a free (2,TT,C)<->(2*TT,C) reshape — no concat/slice
    # copies competing with the MXU feed.
    d = d0[None, :, :] + embs_ref[0]                                   # (2, TT, C)
    for l in range(3):
        d2 = jnp.dot(d.reshape(2 * TT, C).astype(jnp.bfloat16), wdr_ref[l],
                     preferred_element_type=jnp.float32)               # (2TT, C)
        d = jnp.maximum(d2.reshape(2, TT, C) + bdr_ref[l:l + 1, :], 0.0)
        d = d + embs_ref[l + 1]

    # diff_prj: Linear(C, 1) as VPU multiply + XLU lane reduction (not a
    # (C,1) matmul); bprj is an SMEM scalar; lane-dense (1, 2, TT) store.
    wav = jnp.sum(d * wprj_ref[...], axis=2) + bprj_ref[0, 0]          # (2, TT)
    out_ref[...] = wav[None, :, :]


def anerf_forward(x, params):
    source_pose = x['source_pose'].astype(jnp.float32)
    mic_pose = x['mic_pose'].astype(jnp.float32)
    rot = x['rot'].astype(jnp.float32)
    B = source_pose.shape[0]

    src = embed_log(source_pose)              # (B, 63)
    tgt = embed_log(mic_pose)                 # (B, 63)
    ori = embed_log(rot)                      # (B, 63)

    wq, bq = params['wq'], params['bq']       # (189, C), (C,)
    # query = cat([source, target, padded time]): fold batch-constant part.
    sbias = src @ wq[0:63] + tgt @ wq[63:126] + bq                     # (B, C)

    wd0, bd0 = params['wd0'], params['bd0']   # (319, C), (C,)
    obias = ori @ wd0[256:319] + bd0                                   # (B, C)
    wd0_top = wd0[0:256].astype(jnp.bfloat16)                          # (C, C) bf16

    # Batch-invariant time projection precomputed once, streamed as bf16.
    times = 2.0 * jnp.arange(T_FULL, dtype=jnp.float32) / T_FULL - 1.0
    temb = embed_log(times[:, None])                                   # (T, 21)
    tproj = (temb @ wq[126:147]).astype(jnp.bfloat16)                  # (T, C) bf16
    n_t = pl.cdiv(T_FULL, TT)
    t_pad = n_t * TT
    tproj = jnp.pad(tproj, ((0, t_pad - T_FULL), (0, 0)))

    sbias3 = sbias[:, None, :]                                         # (B, 1, C)
    obias3 = obias[:, None, :]                                         # (B, 1, C)
    wm_bf = params['wm'].astype(jnp.bfloat16)                          # (4, C, C)
    wdr_bf = params['wdr'].astype(jnp.bfloat16)                        # (3, C, C)
    # per-layer left/right embeds pre-stacked for pure-broadcast adds
    embs = jnp.stack([params['lemb'], params['remb']], axis=1)[:, :, None, :]  # (4,2,1,C)
    wprj_row = params['wprj'][:, 0][None, :]                           # (1, C)
    bprj = params['bprj'].reshape(1, 1)                                # SMEM scalar

    const2 = lambda t, b: (0, 0)
    const3 = lambda t, b: (0, 0, 0)
    const4 = lambda t, b: (0, 0, 0, 0)

    # 4 mix + 1 shared diff0 on (TT,C) + 3 diff layers on (2TT,C) = 11*TT rows
    flops = 2 * C * C * TT * 11 * B * n_t
    bytes_accessed = (t_pad * C * 2            # bf16 time projection, streamed once
                      + 8 * C * C * 2          # bf16 weight stacks (resident)
                      + B * 2 * t_pad * 4      # merged output
                      + 2 * B * C * 4)         # per-batch folded biases

    # grid = (n_t, B): time outer so the batch-invariant tproj block is not
    # re-fetched across the inner batch loop; both axes "parallel" (the 11-step
    # time axis shards across v7x's 2 TensorCores even when B is tiny).
    out = pl.pallas_call(
        anerf_kernel,
        out_shape=jax.ShapeDtypeStruct((B, 2, t_pad), jnp.float32),
        grid=(n_t, B),
        in_specs=[
            pl.BlockSpec((1, 1, C), lambda t, b: (b, 0, 0)),   # sbias
            pl.BlockSpec((1, 1, C), lambda t, b: (b, 0, 0)),   # obias
            pl.BlockSpec((TT, C), lambda t, b: (t, 0)),        # time projection tile (bf16)
            pl.BlockSpec((4, C, C), const3),                   # mix_mlp weights (bf16)
            pl.BlockSpec((4, C), const2),                      # mix_mlp biases
            pl.BlockSpec((C, C), const2),                      # diff_mlp W0 top (bf16)
            pl.BlockSpec((3, C, C), const3),                   # diff_mlp W1..3 (bf16)
            pl.BlockSpec((3, C), const2),                      # diff_mlp b1..3
            pl.BlockSpec((4, 2, 1, C), const4),                # stacked left/right embeds
            pl.BlockSpec((1, C), const2),                      # diff_prj W row
            pl.BlockSpec(memory_space=pltpu.MemorySpace.SMEM), # diff_prj b (scalar)
        ],
        out_specs=pl.BlockSpec((1, 2, TT), lambda t, b: (b, 0, t)),
        compiler_params=pltpu.CompilerParams(
            dimension_semantics=("parallel", "parallel"),
            # 32 MiB is safe on v5e/v6e and within v7x's 64 MiB physical VMEM;
            # resident footprint at TT=2048 is ~16-20 MiB.
            vmem_limit_bytes=32 * 1024 * 1024),
        cost_estimate=pl.CostEstimate(flops=flops, transcendentals=0,
                                      bytes_accessed=bytes_accessed),
    )(sbias3, obias3, tproj, wm_bf, params['bm'], wd0_top, wdr_bf,
      params['bdr'], embs, wprj_row, bprj)

    # NOTE: rows T_FULL..t_pad of the raw (B, 2, t_pad) output are padding.
    return {'left': out[:, 0, :T_FULL], 'right': out[:, 1, :T_FULL]}


def _bf16_dot(a, w):
    return jnp.dot(a.astype(jnp.bfloat16), w.astype(jnp.bfloat16),
                   preferred_element_type=jnp.float32)


def anerf_reference(x, params):
    """Pure-JAX reference mirroring the kernel's intentional precision recipe
    (bf16 matmul inputs / f32 accumulation, bf16-streamed time projection)."""
    src = embed_log(x['source_pose'].astype(jnp.float32))
    tgt = embed_log(x['mic_pose'].astype(jnp.float32))
    ori = embed_log(x['rot'].astype(jnp.float32))
    wq, bq = params['wq'], params['bq']
    sbias = src @ wq[0:63] + tgt @ wq[63:126] + bq
    wd0, bd0 = params['wd0'], params['bd0']
    obias = ori @ wd0[256:319] + bd0

    times = 2.0 * jnp.arange(T_FULL, dtype=jnp.float32) / T_FULL - 1.0
    temb = embed_log(times[:, None])
    tproj = (temb @ wq[126:147]).astype(jnp.bfloat16).astype(jnp.float32)

    h = jnp.maximum(tproj[None] + sbias[:, None, :], 0.0)              # (B, T, C)
    for l in range(4):
        h = jnp.maximum(_bf16_dot(h, params['wm'][l]) + params['bm'][l], 0.0)
    d0 = jnp.maximum(_bf16_dot(h, wd0[0:256]) + obias[:, None, :], 0.0)

    def branch(emb):
        d = d0 + emb[0]
        for l in range(3):
            d = jnp.maximum(_bf16_dot(d, params['wdr'][l]) + params['bdr'][l], 0.0)
            d = d + emb[l + 1]
        return jnp.sum(d * params['wprj'][:, 0], axis=-1) + params['bprj'][0]

    return {'left': branch(params['lemb']), 'right': branch(params['remb'])}


# ----------------------------------------------------------------------------
# Deterministic parameter init (shapes from ANeRF.__init__, synthetic values)
# ----------------------------------------------------------------------------
def init_params(key):
    keys = jax.random.split(key, 12)

    def lin_w(k, fan_in, fan_out):
        return jax.random.normal(k, (fan_in, fan_out), jnp.float32) / jnp.sqrt(fan_in)

    def lin_b(k, fan_out):
        return 0.01 * jax.random.normal(k, (fan_out,), jnp.float32)

    p = {}
    p['wq'] = lin_w(keys[0], 63 + 63 + 63, C)                  # query_prj
    p['bq'] = lin_b(keys[1], C)
    p['wm'] = jnp.stack([lin_w(k, C, C) for k in jax.random.split(keys[2], 4)])
    p['bm'] = jnp.stack([lin_b(k, C) for k in jax.random.split(keys[3], 4)])
    p['wd0'] = lin_w(keys[4], C + 63, C)                       # diff_mlp layer 0
    p['bd0'] = lin_b(keys[5], C)
    p['wdr'] = jnp.stack([lin_w(k, C, C) for k in jax.random.split(keys[6], 3)])
    p['bdr'] = jnp.stack([lin_b(k, C) for k in jax.random.split(keys[7], 3)])
    p['wprj'] = lin_w(keys[8], C, 1)                           # diff_prj
    p['bprj'] = lin_b(keys[9], 1)
    p['lemb'] = jax.random.normal(keys[10], (4, C), jnp.float32) / jnp.sqrt(C)
    p['remb'] = jax.random.normal(keys[11], (4, C), jnp.float32) / jnp.sqrt(C)
    return p


if __name__ == "__main__":
    key = jax.random.PRNGKey(0)
    k_emb, k_ori, k_par, k_src, k_mic, k_rot = jax.random.split(key, 6)

    # --- (1) Embedding module (the spec): Pallas vs exact JAX reference ---
    NUM_EMBED, NUM_LAYER, CH = 8, 4, 256
    embeds = jax.random.normal(k_emb, (NUM_EMBED, NUM_LAYER, CH), jnp.float32) / jnp.sqrt(CH)
    emb_fn = jax.jit(embedding_forward)

    ori_in = jax.random.uniform(k_ori, (2,), jnp.float32, -1.0, 1.0)
    emb_out = emb_fn(embeds, ori_in)
    jax.block_until_ready(emb_out)
    emb_ref = embedding_reference(embeds, ori_in)
    assert emb_out.shape == (2, NUM_LAYER, CH)
    assert bool(jnp.allclose(emb_out, emb_ref, atol=1e-5, rtol=1e-5))

    # boundary / ragged-batch edge cases (exact endpoints, B not multiple of 8)
    ori_edge = jnp.array([-1.0, 1.0, 0.0, 0.37, -0.42], jnp.float32)
    emb_edge = emb_fn(embeds, ori_edge)
    jax.block_until_ready(emb_edge)
    assert bool(jnp.allclose(emb_edge, embedding_reference(embeds, ori_edge),
                             atol=1e-5, rtol=1e-5))

    # --- (2) ANeRF forward (visual=False, relative=False) with perf fixes ---
    # TODO(synk): visual=True (av_mlp) and the relative=True wiring of the
    # Embedding output into ANeRF.forward are not exercised by this config.
    params = init_params(k_par)
    B = 2
    x = {
        'source_pose': jax.random.uniform(k_src, (B, 3), jnp.float32, -1.0, 1.0),
        'mic_pose':    jax.random.uniform(k_mic, (B, 3), jnp.float32, -1.0, 1.0),
        'rot':         jax.random.uniform(k_rot, (B, 3), jnp.float32, -1.0, 1.0),
    }
    out = jax.jit(lambda xx: anerf_forward(xx, params))(x)
    jax.block_until_ready(out)
    assert out['left'].shape == (B, T_FULL)
    assert out['right'].shape == (B, T_FULL)
    ref = anerf_reference(x, params)
    assert bool(jnp.allclose(out['left'], ref['left'], atol=1e-2, rtol=1e-2))
    assert bool(jnp.allclose(out['right'], ref['right'], atol=1e-2, rtol=1e-2))

    print("KERNEL_OK")
</pallas_src>

<mosaic_0001>
module attributes {stable_mosaic.version = 11 : i64} {
  func.func @embedding_kernel(%arg0: i32, %arg1: memref<8xi32, #tpu.memory_space<smem>>, %arg2: memref<8x2xf32, #tpu.memory_space<smem>>, %arg3: memref<10x8x128xf32, #tpu.memory_space<vmem>>, %arg4: memref<8x8x128xf32, #tpu.memory_space<vmem>>) attributes {dimension_semantics = [#tpu.dimension_semantics<parallel>], iteration_bounds = array<i64: 1>, scalar_prefetch = 0 : i64, scratch_operands = 0 : i64, tpu.core_type = #tpu.core_type<tc>, window_params = [{transform_indices = @transform_0, window_bounds = array<i64: 8>}, {transform_indices = @transform_1, window_bounds = array<i64: 8, 2>}, {pipeline_mode = #tpu.pipeline_mode<synchronous>, transform_indices = @transform_2, window_bounds = array<i64: 10, 8, 128>}, {transform_indices = @transform_3, window_bounds = array<i64: 8, 8, 128>}]} {
    %c8_i32 = arith.constant 8 : i32
    %0 = arith.muli %arg0, %c8_i32 : i32
    %c0_i32 = arith.constant 0 : i32
    %1 = arith.addi %0, %c0_i32 : i32
    %2 = arith.index_cast %1 : i32 to index
    %3 = memref.load %arg1[%2] : memref<8xi32, #tpu.memory_space<smem>>
    %4 = arith.index_cast %1 : i32 to index
    %c0 = arith.constant 0 : index
    %5 = memref.load %arg2[%4, %c0] : memref<8x2xf32, #tpu.memory_space<smem>>
    %6 = arith.index_cast %1 : i32 to index
    %c1 = arith.constant 1 : index
    %7 = memref.load %arg2[%6, %c1] : memref<8x2xf32, #tpu.memory_space<smem>>
    %8 = arith.index_cast %3 : i32 to index
    %c0_0 = arith.constant 0 : index
    %c0_1 = arith.constant 0 : index
    %9 = vector.load %arg3[%8, %c0_0, %c0_1] : memref<10x8x128xf32, #tpu.memory_space<vmem>>, vector<1x8x128xf32>
    %10 = vector.shape_cast %9 : vector<1x8x128xf32> to vector<8x128xf32>
    %11 = vector.broadcast %5 : f32 to vector<8x128xf32>
    %12 = arith.mulf %10, %11 : vector<8x128xf32>
    %c1_i32 = arith.constant 1 : i32
    %13 = arith.addi %3, %c1_i32 : i32
    %14 = arith.index_cast %13 : i32 to index
    %c0_2 = arith.constant 0 : index
    %c0_3 = arith.constant 0 : index
    %15 = vector.load %arg3[%14, %c0_2, %c0_3] : memref<10x8x128xf32, #tpu.memory_space<vmem>>, vector<1x8x128xf32>
    %16 = vector.shape_cast %15 : vector<1x8x128xf32> to vector<8x128xf32>
    %17 = vector.broadcast %7 : f32 to vector<8x128xf32>
    %18 = arith.mulf %16, %17 : vector<8x128xf32>
    %19 = arith.addf %12, %18 : vector<8x128xf32>
    %c0_4 = arith.constant 0 : index
    %c0_5 = arith.constant 0 : index
    %c0_6 = arith.constant 0 : index
    %20 = vector.load %arg4[%c0_4, %c0_5, %c0_6] : memref<8x8x128xf32, #tpu.memory_space<vmem>>, vector<1x8x128xf32>
    %21 = vector.shape_cast %20 : vector<1x8x128xf32> to vector<8x128xf32>
    %22 = vector.shape_cast %19 : vector<8x128xf32> to vector<1x8x128xf32>
    tpu.vector_store %arg4[%c0_4, %c0_5, %c0_6], %22 {strides = array<i32>} : memref<8x8x128xf32, #tpu.memory_space<vmem>>, vector<1x8x128xf32>,
    %c1_i32_7 = arith.constant 1 : i32
    %23 = arith.addi %0, %c1_i32_7 : i32
    %24 = arith.index_cast %23 : i32 to index
    %25 = memref.load %arg1[%24] : memref<8xi32, #tpu.memory_space<smem>>
    %26 = arith.index_cast %23 : i32 to index
    %c0_8 = arith.constant 0 : index
    %27 = memref.load %arg2[%26, %c0_8] : memref<8x2xf32, #tpu.memory_space<smem>>
    %28 = arith.index_cast %23 : i32 to index
    %c1_9 = arith.constant 1 : index
    %29 = memref.load %arg2[%28, %c1_9] : memref<8x2xf32, #tpu.memory_space<smem>>
    %30 = arith.index_cast %25 : i32 to index
    %c0_10 = arith.constant 0 : index
    %c0_11 = arith.constant 0 : index
    %31 = vector.load %arg3[%30, %c0_10, %c0_11] : memref<10x8x128xf32, #tpu.memory_space<vmem>>, vector<1x8x128xf32>
    %32 = vector.shape_cast %31 : vector<1x8x128xf32> to vector<8x128xf32>
    %33 = vector.broadcast %27 : f32 to vector<8x128xf32>
    %34 = arith.mulf %32, %33 : vector<8x128xf32>
    %c1_i32_12 = arith.constant 1 : i32
    %35 = arith.addi %25, %c1_i32_12 : i32
    %36 = arith.index_cast %35 : i32 to index
    %c0_13 = arith.constant 0 : index
    %c0_14 = arith.constant 0 : index
    %37 = vector.load %arg3[%36, %c0_13, %c0_14] : memref<10x8x128xf32, #tpu.memory_space<vmem>>, vector<1x8x128xf32>
    %38 = vector.shape_cast %37 : vector<1x8x128xf32> to vector<8x128xf32>
    %39 = vector.broadcast %29 : f32 to vector<8x128xf32>
    %40 = arith.mulf %38, %39 : vector<8x128xf32>
    %41 = arith.addf %34, %40 : vector<8x128xf32>
    %c1_15 = arith.constant 1 : index
    %c0_16 = arith.constant 0 : index
    %c0_17 = arith.constant 0 : index
    %42 = vector.load %arg4[%c1_15, %c0_16, %c0_17] : memref<8x8x128xf32, #tpu.memory_space<vmem>>, vector<1x8x128xf32>
    %43 = vector.shape_cast %42 : vector<1x8x128xf32> to vector<8x128xf32>
    %44 = vector.shape_cast %41 : vector<8x128xf32> to vector<1x8x128xf32>
    tpu.vector_store %arg4[%c1_15, %c0_16, %c0_17], %44 {strides = array<i32>} : memref<8x8x128xf32, #tpu.memory_space<vmem>>, vector<1x8x128xf32>,
    %c2_i32 = arith.constant 2 : i32
    %45 = arith.addi %0, %c2_i32 : i32
    %46 = arith.index_cast %45 : i32 to index
    %47 = memref.load %arg1[%46] : memref<8xi32, #tpu.memory_space<smem>>
    %48 = arith.index_cast %45 : i32 to index
    %c0_18 = arith.constant 0 : index
    %49 = memref.load %arg2[%48, %c0_18] : memref<8x2xf32, #tpu.memory_space<smem>>
    %50 = arith.index_cast %45 : i32 to index
    %c1_19 = arith.constant 1 : index
    %51 = memref.load %arg2[%50, %c1_19] : memref<8x2xf32, #tpu.memory_space<smem>>
    %52 = arith.index_cast %47 : i32 to index
    %c0_20 = arith.constant 0 : index
    %c0_21 = arith.constant 0 : index
    %53 = vector.load %arg3[%52, %c0_20, %c0_21] : memref<10x8x128xf32, #tpu.memory_space<vmem>>, vector<1x8x128xf32>
    %54 = vector.shape_cast %53 : vector<1x8x128xf32> to vector<8x128xf32>
    %55 = vector.broadcast %49 : f32 to vector<8x128xf32>
    %56 = arith.mulf %54, %55 : vector<8x128xf32>
    %c1_i32_22 = arith.constant 1 : i32
    %57 = arith.addi %47, %c1_i32_22 : i32
    %58 = arith.index_cast %57 : i32 to index
    %c0_23 = arith.constant 0 : index
    %c0_24 = arith.constant 0 : index
    %59 = vector.load %arg3[%58, %c0_23, %c0_24] : memref<10x8x128xf32, #tpu.memory_space<vmem>>, vector<1x8x128xf32>
    %60 = vector.shape_cast %59 : vector<1x8x128xf32> to vector<8x128xf32>
    %61 = vector.broadcast %51 : f32 to vector<8x128xf32>
    %62 = arith.mulf %60, %61 : vector<8x128xf32>
    %63 = arith.addf %56, %62 : vector<8x128xf32>
    %c2 = arith.constant 2 : index
    %c0_25 = arith.constant 0 : index
    %c0_26 = arith.constant 0 : index
    %64 = vector.load %arg4[%c2, %c0_25, %c0_26] : memref<8x8x128xf32, #tpu.memory_space<vmem>>, vector<1x8x128xf32>
    %65 = vector.shape_cast %64 : vector<1x8x128xf32> to vector<8x128xf32>
    %66 = vector.shape_cast %63 : vector<8x128xf32> to vector<1x8x128xf32>
    tpu.vector_store %arg4[%c2, %c0_25, %c0_26], %66 {strides = array<i32>} : memref<8x8x128xf32, #tpu.memory_space<vmem>>, vector<1x8x128xf32>,
    %c3_i32 = arith.constant 3 : i32
    %67 = arith.addi %0, %c3_i32 : i32
    %68 = arith.index_cast %67 : i32 to index
    %69 = memref.load %arg1[%68] : memref<8xi32, #tpu.memory_space<smem>>
    %70 = arith.index_cast %67 : i32 to index
    %c0_27 = arith.constant 0 : index
    %71 = memref.load %arg2[%70, %c0_27] : memref<8x2xf32, #tpu.memory_space<smem>>
    %72 = arith.index_cast %67 : i32 to index
    %c1_28 = arith.constant 1 : index
    %73 = memref.load %arg2[%72, %c1_28] : memref<8x2xf32, #tpu.memory_space<smem>>
    %74 = arith.index_cast %69 : i32 to index
    %c0_29 = arith.constant 0 : index
    %c0_30 = arith.constant 0 : index
    %75 = vector.load %arg3[%74, %c0_29, %c0_30] : memref<10x8x128xf32, #tpu.memory_space<vmem>>, vector<1x8x128xf32>
    %76 = vector.shape_cast %75 : vector<1x8x128xf32> to vector<8x128xf32>
    %77 = vector.broadcast %71 : f32 to vector<8x128xf32>
    %78 = arith.mulf %76, %77 : vector<8x128xf32>
    %c1_i32_31 = arith.constant 1 : i32
    %79 = arith.addi %69, %c1_i32_31 : i32
    %80 = arith.index_cast %79 : i32 to index
    %c0_32 = arith.constant 0 : index
    %c0_33 = arith.constant 0 : index
    %81 = vector.load %arg3[%80, %c0_32, %c0_33] : memref<10x8x128xf32, #tpu.memory_space<vmem>>, vector<1x8x128xf32>
    %82 = vector.shape_cast %81 : vector<1x8x128xf32> to vector<8x128xf32>
    %83 = vector.broadcast %73 : f32 to vector<8x128xf32>
    %84 = arith.mulf %82, %83 : vector<8x128xf32>
    %85 = arith.addf %78, %84 : vector<8x128xf32>
    %c3 = arith.constant 3 : index
    %c0_34 = arith.constant 0 : index
    %c0_35 = arith.constant 0 : index
    %86 = vector.load %arg4[%c3, %c0_34, %c0_35] : memref<8x8x128xf32, #tpu.memory_space<vmem>>, vector<1x8x128xf32>
    %87 = vector.shape_cast %86 : vector<1x8x128xf32> to vector<8x128xf32>
    %88 = vector.shape_cast %85 : vector<8x128xf32> to vector<1x8x128xf32>
    tpu.vector_store %arg4[%c3, %c0_34, %c0_35], %88 {strides = array<i32>} : memref<8x8x128xf32, #tpu.memory_space<vmem>>, vector<1x8x128xf32>,
    %c4_i32 = arith.constant 4 : i32
    %89 = arith.addi %0, %c4_i32 : i32
    %90 = arith.index_cast %89 : i32 to index
    %91 = memref.load %arg1[%90] : memref<8xi32, #tpu.memory_space<smem>>
    %92 = arith.index_cast %89 : i32 to index
    %c0_36 = arith.constant 0 : index
    %93 = memref.load %arg2[%92, %c0_36] : memref<8x2xf32, #tpu.memory_space<smem>>
    %94 = arith.index_cast %89 : i32 to index
    %c1_37 = arith.constant 1 : index
    %95 = memref.load %arg2[%94, %c1_37] : memref<8x2xf32, #tpu.memory_space<smem>>
    %96 = arith.index_cast %91 : i32 to index
    %c0_38 = arith.constant 0 : index
    %c0_39 = arith.constant 0 : index
    %97 = vector.load %arg3[%96, %c0_38, %c0_39] : memref<10x8x128xf32, #tpu.memory_space<vmem>>, vector<1x8x128xf32>
    %98 = vector.shape_cast %97 : vector<1x8x128xf32> to vector<8x128xf32>
    %99 = vector.broadcast %93 : f32 to vector<8x128xf32>
    %100 = arith.mulf %98, %99 : vector<8x128xf32>
    %c1_i32_40 = arith.constant 1 : i32
    %101 = arith.addi %91, %c1_i32_40 : i32
    %102 = arith.index_cast %101 : i32 to index
    %c0_41 = arith.constant 0 : index
    %c0_42 = arith.constant 0 : index
    %103 = vector.load %arg3[%102, %c0_41, %c0_42] : memref<10x8x128xf32, #tpu.memory_space<vmem>>, vector<1x8x128xf32>
    %104 = vector.shape_cast %103 : vector<1x8x128xf32> to vector<8x128xf32>
    %105 = vector.broadcast %95 : f32 to vector<8x128xf32>
    %106 = arith.mulf %104, %105 : vector<8x128xf32>
    %107 = arith.addf %100, %106 : vector<8x128xf32>
    %c4 = arith.constant 4 : index
    %c0_43 = arith.constant 0 : index
    %c0_44 = arith.constant 0 : index
    %108 = vector.load %arg4[%c4, %c0_43, %c0_44] : memref<8x8x128xf32, #tpu.memory_space<vmem>>, vector<1x8x128xf32>
    %109 = vector.shape_cast %108 : vector<1x8x128xf32> to vector<8x128xf32>
    %110 = vector.shape_cast %107 : vector<8x128xf32> to vector<1x8x128xf32>
    tpu.vector_store %arg4[%c4, %c0_43, %c0_44], %110 {strides = array<i32>} : memref<8x8x128xf32, #tpu.memory_space<vmem>>, vector<1x8x128xf32>,
    %c5_i32 = arith.constant 5 : i32
    %111 = arith.addi %0, %c5_i32 : i32
    %112 = arith.index_cast %111 : i32 to index
    %113 = memref.load %arg1[%112] : memref<8xi32, #tpu.memory_space<smem>>
    %114 = arith.index_cast %111 : i32 to index
    %c0_45 = arith.constant 0 : index
    %115 = memref.load %arg2[%114, %c0_45] : memref<8x2xf32, #tpu.memory_space<smem>>
    %116 = arith.index_cast %111 : i32 to index
    %c1_46 = arith.constant 1 : index
    %117 = memref.load %arg2[%116, %c1_46] : memref<8x2xf32, #tpu.memory_space<smem>>
    %118 = arith.index_cast %113 : i32 to index
    %c0_47 = arith.constant 0 : index
    %c0_48 = arith.constant 0 : index
    %119 = vector.load %arg3[%118, %c0_47, %c0_48] : memref<10x8x128xf32, #tpu.memory_space<vmem>>, vector<1x8x128xf32>
    %120 = vector.shape_cast %119 : vector<1x8x128xf32> to vector<8x128xf32>
    %121 = vector.broadcast %115 : f32 to vector<8x128xf32>
    %122 = arith.mulf %120, %121 : vector<8x128xf32>
    %c1_i32_49 = arith.constant 1 : i32
    %123 = arith.addi %113, %c1_i32_49 : i32
    %124 = arith.index_cast %123 : i32 to index
    %c0_50 = arith.constant 0 : index
    %c0_51 = arith.constant 0 : index
    %125 = vector.load %arg3[%124, %c0_50, %c0_51] : memref<10x8x128xf32, #tpu.memory_space<vmem>>, vector<1x8x128xf32>
    %126 = vector.shape_cast %125 : vector<1x8x128xf32> to vector<8x128xf32>
    %127 = vector.broadcast %117 : f32 to vector<8x128xf32>
    %128 = arith.mulf %126, %127 : vector<8x128xf32>
    %129 = arith.addf %122, %128 : vector<8x128xf32>
    %c5 = arith.constant 5 : index
    %c0_52 = arith.constant 0 : index
    %c0_53 = arith.constant 0 : index
    %130 = vector.load %arg4[%c5, %c0_52, %c0_53] : memref<8x8x128xf32, #tpu.memory_space<vmem>>, vector<1x8x128xf32>
    %131 = vector.shape_cast %130 : vector<1x8x128xf32> to vector<8x128xf32>
    %132 = vector.shape_cast %129 : vector<8x128xf32> to vector<1x8x128xf32>
    tpu.vector_store %arg4[%c5, %c0_52, %c0_53], %132 {strides = array<i32>} : memref<8x8x128xf32, #tpu.memory_space<vmem>>, vector<1x8x128xf32>,
    %c6_i32 = arith.constant 6 : i32
    %133 = arith.addi %0, %c6_i32 : i32
    %134 = arith.index_cast %133 : i32 to index
    %135 = memref.load %arg1[%134] : memref<8xi32, #tpu.memory_space<smem>>
    %136 = arith.index_cast %133 : i32 to index
    %c0_54 = arith.constant 0 : index
    %137 = memref.load %arg2[%136, %c0_54] : memref<8x2xf32, #tpu.memory_space<smem>>
    %138 = arith.index_cast %133 : i32 to index
    %c1_55 = arith.constant 1 : index
    %139 = memref.load %arg2[%138, %c1_55] : memref<8x2xf32, #tpu.memory_space<smem>>
    %140 = arith.index_cast %135 : i32 to index
    %c0_56 = arith.constant 0 : index
    %c0_57 = arith.constant 0 : index
    %141 = vector.load %arg3[%140, %c0_56, %c0_57] : memref<10x8x128xf32, #tpu.memory_space<vmem>>, vector<1x8x128xf32>
    %142 = vector.shape_cast %141 : vector<1x8x128xf32> to vector<8x128xf32>
    %143 = vector.broadcast %137 : f32 to vector<8x128xf32>
    %144 = arith.mulf %142, %143 : vector<8x128xf32>
    %c1_i32_58 = arith.constant 1 : i32
    %145 = arith.addi %135, %c1_i32_58 : i32
    %146 = arith.index_cast %145 : i32 to index
    %c0_59 = arith.constant 0 : index
    %c0_60 = arith.constant 0 : index
    %147 = vector.load %arg3[%146, %c0_59, %c0_60] : memref<10x8x128xf32, #tpu.memory_space<vmem>>, vector<1x8x128xf32>
    %148 = vector.shape_cast %147 : vector<1x8x128xf32> to vector<8x128xf32>
    %149 = vector.broadcast %139 : f32 to vector<8x128xf32>
    %150 = arith.mulf %148, %149 : vector<8x128xf32>
    %151 = arith.addf %144, %150 : vector<8x128xf32>
    %c6 = arith.constant 6 : index
    %c0_61 = arith.constant 0 : index
    %c0_62 = arith.constant 0 : index
    %152 = vector.load %arg4[%c6, %c0_61, %c0_62] : memref<8x8x128xf32, #tpu.memory_space<vmem>>, vector<1x8x128xf32>
    %153 = vector.shape_cast %152 : vector<1x8x128xf32> to vector<8x128xf32>
    %154 = vector.shape_cast %151 : vector<8x128xf32> to vector<1x8x128xf32>
    tpu.vector_store %arg4[%c6, %c0_61, %c0_62], %154 {strides = array<i32>} : memref<8x8x128xf32, #tpu.memory_space<vmem>>, vector<1x8x128xf32>,
    %c7_i32 = arith.constant 7 : i32
    %155 = arith.addi %0, %c7_i32 : i32
    %156 = arith.index_cast %155 : i32 to index
    %157 = memref.load %arg1[%156] : memref<8xi32, #tpu.memory_space<smem>>
    %158 = arith.index_cast %155 : i32 to index
    %c0_63 = arith.constant 0 : index
    %159 = memref.load %arg2[%158, %c0_63] : memref<8x2xf32, #tpu.memory_space<smem>>
    %160 = arith.index_cast %155 : i32 to index
    %c1_64 = arith.constant 1 : index
    %161 = memref.load %arg2[%160, %c1_64] : memref<8x2xf32, #tpu.memory_space<smem>>
    %162 = arith.index_cast %157 : i32 to index
    %c0_65 = arith.constant 0 : index
    %c0_66 = arith.constant 0 : index
    %163 = vector.load %arg3[%162, %c0_65, %c0_66] : memref<10x8x128xf32, #tpu.memory_space<vmem>>, vector<1x8x128xf32>
    %164 = vector.shape_cast %163 : vector<1x8x128xf32> to vector<8x128xf32>
    %165 = vector.broadcast %159 : f32 to vector<8x128xf32>
    %166 = arith.mulf %164, %165 : vector<8x128xf32>
    %c1_i32_67 = arith.constant 1 : i32
    %167 = arith.addi %157, %c1_i32_67 : i32
    %168 = arith.index_cast %167 : i32 to index
    %c0_68 = arith.constant 0 : index
    %c0_69 = arith.constant 0 : index
    %169 = vector.load %arg3[%168, %c0_68, %c0_69] : memref<10x8x128xf32, #tpu.memory_space<vmem>>, vector<1x8x128xf32>
    %170 = vector.shape_cast %169 : vector<1x8x128xf32> to vector<8x128xf32>
    %171 = vector.broadcast %161 : f32 to vector<8x128xf32>
    %172 = arith.mulf %170, %171 : vector<8x128xf32>
    %173 = arith.addf %166, %172 : vector<8x128xf32>
    %c7 = arith.constant 7 : index
    %c0_70 = arith.constant 0 : index
    %c0_71 = arith.constant 0 : index
    %174 = vector.load %arg4[%c7, %c0_70, %c0_71] : memref<8x8x128xf32, #tpu.memory_space<vmem>>, vector<1x8x128xf32>
    %175 = vector.shape_cast %174 : vector<1x8x128xf32> to vector<8x128xf32>
    %176 = vector.shape_cast %173 : vector<8x128xf32> to vector<1x8x128xf32>
    tpu.vector_store %arg4[%c7, %c0_70, %c0_71], %176 {strides = array<i32>} : memref<8x8x128xf32, #tpu.memory_space<vmem>>, vector<1x8x128xf32>,
    return
  }
  func.func @transform_0(%arg0: i32) -> i32 {
    %c0_i32 = arith.constant 0 : i32
    %c0_i32_0 = arith.constant 0 : i32
    return %c0_i32 : i32
  }
  func.func @transform_1(%arg0: i32) -> (i32, i32) {
    %c0_i32 = arith.constant 0 : i32
    %c0_i32_0 = arith.constant 0 : i32
    %c0_i32_1 = arith.constant 0 : i32
    return %c0_i32, %c0_i32_0 : i32, i32
  }
  func.func @transform_2(%arg0: i32) -> (i32, i32, i32) {
    %c0_i32 = arith.constant 0 : i32
    %c0_i32_0 = arith.constant 0 : i32
    %c0_i32_1 = arith.constant 0 : i32
    %c0_i32_2 = arith.constant 0 : i32
    return %c0_i32, %c0_i32_0, %c0_i32_1 : i32, i32, i32
  }
  func.func @transform_3(%arg0: i32) -> (i32, i32, i32) {
    %c0_i32 = arith.constant 0 : i32
    %c0_i32_0 = arith.constant 0 : i32
    %c0_i32_1 = arith.constant 0 : i32
    return %arg0, %c0_i32, %c0_i32_0 : i32, i32, i32
  }
}

</mosaic_0001>

<bundles_post_ra>
// kernel: embedding_forward.1
= control target key start
LH: loop header
LB: loop body
LE: loop exit
PB: predicated region body
PF: predicated region fallthrough
CT: control target
= control target key end

     0   :  { %8 = vsyncpa [#allocation3], 0  ;;  %s418_s0 = inlined_call_operand.vmem [shape: s32[8], index: 0, kind: input, shape index: {}]   ;;  %s419_s1 = inlined_call_operand.vmem [shape: f32[8,2], index: 1, kind: input, shape index: {}]   ;;  %s420_s2 = inlined_call_operand.vmem [shape: f32[10,8,128], index: 2, kind: input, shape index: {}]   ;;  %s421_s3 = inlined_call_operand.vmem [shape: f32[8,8,128], index: 3, kind: output, shape index: {}]  }
   0x1   :  { %s16_s14 = sshll.u32 %s418_s0, 4  ;;  %s17_s14 = int_to_ptr.vmem [resolvable:$true] %s16_s14 }
   0x2   :  { %9 = vsyncpa [#allocation5], 0  ;;  %s26_s17 = sshll.u32 %s419_s1, 4  ;;  %s299_s18 = scalar_lea.vmem %s17_s14, 16  ;;  %s27_s17 = int_to_ptr.vmem [resolvable:$true] %s26_s17 }
   0x3   :  { %p300_p0 = scmp.ne.s32.totalorder %s17_s14, %s299_s18  ;;  %p304_p1 = scmp.lt.s32.totalorder %s17_s14, %s17_s14 }
   0x4   :  { %p305_p2 = scmp.lt.s32.totalorder %s299_s18, %s299_s18 }
   0x6   :  { %p306_p3 = por %p305_p2, %p304_p1 }
   0x8   :  { %p307_p4 = pnand %p306_p3, %p300_p0 }
   0xa   :  { %310 = shalt.err (!%p307_p4)
}
   0xb   :  { %s327_s19 = smov [#allocation2]   ;;  %s311_s20 = scalar_lea.vmem %s27_s17, 128 }
   0xc   :  { %19 = dma.vmem_to_smem %s17_s14, 16, %s327_s19, [#allocation3]  }
   0xd   :  { %p312_p5 = scmp.ne.s32.totalorder %s27_s17, %s311_s20  ;;  %p316_p6 = scmp.lt.s32.totalorder %s27_s17, %s27_s17 }
   0xe   :  { %p317_p7 = scmp.lt.s32.totalorder %s311_s20, %s311_s20 }
  0x10   :  { %p318_p8 = por %p317_p7, %p316_p6 }
  0x12   :  { %p319_p9 = pnand %p318_p8, %p312_p5 }
  0x14   :  { %322 = shalt.err (!%p319_p9)
}
  0x15   :  { %s328_s0 = smov [#allocation4]  }
  0x16   :  { %29 = dma.vmem_to_smem %s27_s17, 128, %s328_s0, [#allocation5]  }
  0x17   :  { %323 = dma.done.wait [#allocation3], 16  }
  0x18   :  { %324 = vsyncadd [#allocation3], 4294967280 }
  0x19   :  { %325 = dma.done.wait [#allocation5], 128  }
  0x1a   :  { %326 = vsyncadd [#allocation5], 4294967168 }
  0x1b   :  { %38 = sfence }
  0x1c   :  { %s40_s1 = sld [smem:[#allocation2]] }
  0x1d   :  { %s42_s21 = sld [smem:[#allocation4]] }
  0x1e   :  { %s244_s22 = sld [smem:[#allocation4 + $0x1]] }
  0x1f   :  { %s248_s23 = sld [smem:[#allocation2 + $0x1]] }
  0x20   :  { %s249_s24 = sld [smem:[#allocation4 + $0x80]] }
  0x21   :  { %s250_s25 = sld [smem:[#allocation4 + $0x81]] }
  0x22   :  { %s245_s26 = sshll.u32 %s40_s1, 3  ;;  %s255_s27 = sld [smem:[#allocation2 + $0x2]] }
  0x23   :  { %s46_s30 = scalar_lea.vmem %s420_s2, %s245_s26  ;;  %v48_v0 = vstv %s42_s21  ;;  %s256_s4 = sld [smem:[#allocation4 + $0x100]] }
  0x24   :  { %v47_v1 = vld [vmem:[%s46_s30] sm:$0xff]  ;;  %v247_v2 = vld [vmem:[%s46_s30 + $0x8] sm:$0xff]  ;;  %v54_v3 = vstv %s244_s22  ;;  %s257_s5 = sld [smem:[#allocation4 + $0x101]] }
  0x25   :  { %v49_v4 = vmul.f32 %v48_v0, %v47_v1  ;;  %v55_v5 = vmul.f32 %v247_v2, %v54_v3  ;;  %s251_s6 = sshll.u32 %s248_s23, 3  ;;  %s262_s7 = sld [smem:[#allocation2 + $0x3]] }
  0x26   :  { %s65_s10 = scalar_lea.vmem %s420_s2, %s251_s6  ;;  %v67_v6 = vstv %s249_s24  ;;  %s361_s11 = sld [smem:[#allocation4 + $0x180]] }
  0x27   :  { %v56_v7 = vadd.f32 %v55_v5, %v49_v4  ;;  %v66_v8 = vld [vmem:[%s65_s10] sm:$0xff]  ;;  %v253_v9 = vld [vmem:[%s65_s10 + $0x8] sm:$0xff]  ;;  %v73_v10 = vstv %s250_s25  ;;  %s264_s12 = sld [smem:[#allocation4 + $0x181]] }
  0x28   :  { %v68_v11 = vmul.f32 %v67_v6, %v66_v8  ;;  %v74_v12 = vmul.f32 %v253_v9, %v73_v10  ;;  %s258_s13 = sshll.u32 %s255_s27, 3  ;;  %s363_s14 = sld [smem:[#allocation2 + $0x4]] }
  0x29   :  { %57 = vst [vmem:[%s421_s3] sm:$0xff] %v56_v7  ;;  %s85_s19 = scalar_lea.vmem %s420_s2, %s258_s13  ;;  %v87_v13 = vstv %s256_s4  ;;  %s371_s20 = sld [smem:[#allocation4 + $0x200]] }
  0x2a   :  { %v75_v14 = vadd.f32 %v74_v12, %v68_v11  ;;  %v86_v15 = vld [vmem:[%s85_s19] sm:$0xff]  ;;  %v260_v16 = vld [vmem:[%s85_s19 + $0x8] sm:$0xff]  ;;  %v93_v17 = vstv %s257_s5  ;;  %s271_s0 = sld [smem:[#allocation4 + $0x201]] }
  0x2b   :  { %v88_v18 = vmul.f32 %v87_v13, %v86_v15  ;;  %v94_v19 = vmul.f32 %v260_v16, %v93_v17  ;;  %s265_s1 = sshll.u32 %s262_s7, 3  ;;  %s373_s21 = sld [smem:[#allocation2 + $0x5]] }
  0x2c   :  { %254 = vst [vmem:[%s421_s3 + $0x8] sm:$0xff] %v75_v14  ;;  %s105_s26 = scalar_lea.vmem %s420_s2, %s265_s1  ;;  %v107_v20 = vstv %s361_s11  ;;  %s382_s27 = sld [smem:[#allocation4 + $0x280]] }
  0x2d   :  { %v95_v21 = vadd.f32 %v94_v19, %v88_v18  ;;  %v106_v22 = vld [vmem:[%s105_s26] sm:$0xff]  ;;  %v267_v23 = vld [vmem:[%s105_s26 + $0x8] sm:$0xff]  ;;  %v113_v24 = vstv %s264_s12  ;;  %s278_s28 = sld [smem:[#allocation4 + $0x281]] }
  0x2e   :  { %v108_v25 = vmul.f32 %v107_v20, %v106_v22  ;;  %v114_v26 = vmul.f32 %v267_v23, %v113_v24  ;;  %s272_s29 = sshll.u32 %s363_s14, 3  ;;  %s283_s30 = sld [smem:[#allocation2 + $0x6]] }
  0x2f   :  { %261 = vst [vmem:[%s421_s3 + $0x10] sm:$0xff] %v95_v21  ;;  %s125_s8 = scalar_lea.vmem %s420_s2, %s272_s29  ;;  %v127_v27 = vstv %s371_s20  ;;  %s284_s9 = sld [smem:[#allocation4 + $0x300]] }
  0x30   :  { %v115_v28 = vadd.f32 %v114_v26, %v108_v25  ;;  %v126_v29 = vld [vmem:[%s125_s8] sm:$0xff]  ;;  %v274_v30 = vld [vmem:[%s125_s8 + $0x8] sm:$0xff]  ;;  %v133_v31 = vstv %s271_s0  ;;  %s285_s10 = sld [smem:[#allocation4 + $0x301]] }
  0x31   :  { %v128_v32 = vmul.f32 %v127_v27, %v126_v29  ;;  %v134_v33 = vmul.f32 %v274_v30, %v133_v31  ;;  %s279_s11 = sshll.u32 %s373_s21, 3  ;;  %s290_s12 = sld [smem:[#allocation2 + $0x7]] }
  0x32   :  { %268 = vst [vmem:[%s421_s3 + $0x18] sm:$0xff] %v115_v28  ;;  %s145_s17 = scalar_lea.vmem %s420_s2, %s279_s11  ;;  %v147_v34 = vstv %s382_s27  ;;  %s291_s18 = sld [smem:[#allocation4 + $0x380]] }
  0x33   :  { %v135_v35 = vadd.f32 %v134_v33, %v128_v32  ;;  %v146_v36 = vld [vmem:[%s145_s17] sm:$0xff]  ;;  %v281_v37 = vld [vmem:[%s145_s17 + $0x8] sm:$0xff]  ;;  %v153_v38 = vstv %s278_s28  ;;  %s292_s19 = sld [smem:[#allocation4 + $0x381]] }
  0x34   :  { %v148_v39 = vmul.f32 %v147_v34, %v146_v36  ;;  %v154_v40 = vmul.f32 %v281_v37, %v153_v38  ;;  %s286_s20 = sshll.u32 %s283_s30, 3 }
  0x35   :  { %275 = vst [vmem:[%s421_s3 + $0x20] sm:$0xff] %v135_v35  ;;  %s165_s23 = scalar_lea.vmem %s420_s2, %s286_s20  ;;  %v167_v41 = vstv %s284_s9 }
  0x36   :  { %v155_v42 = vadd.f32 %v154_v40, %v148_v39  ;;  %v166_v43 = vld [vmem:[%s165_s23] sm:$0xff]  ;;  %v288_v44 = vld [vmem:[%s165_s23 + $0x8] sm:$0xff]  ;;  %v173_v45 = vstv %s285_s10 }
  0x37   :  { %v168_v46 = vmul.f32 %v167_v41, %v166_v43  ;;  %v174_v47 = vmul.f32 %v288_v44, %v173_v45  ;;  %s293_s24 = sshll.u32 %s290_s12, 3 }
  0x38   :  { %282 = vst [vmem:[%s421_s3 + $0x28] sm:$0xff] %v155_v42  ;;  %s185_s29 = scalar_lea.vmem %s420_s2, %s293_s24  ;;  %v187_v48 = vstv %s291_s18 }
  0x39   :  { %v175_v49 = vadd.f32 %v174_v47, %v168_v46  ;;  %v186_v50 = vld [vmem:[%s185_s29] sm:$0xff]  ;;  %v295_v51 = vld [vmem:[%s185_s29 + $0x8] sm:$0xff]  ;;  %v193_v52 = vstv %s292_s19 }
  0x3a   :  { %v188_v53 = vmul.f32 %v187_v48, %v186_v50  ;;  %v194_v54 = vmul.f32 %v295_v51, %v193_v52 }
  0x3b   :  { %289 = vst [vmem:[%s421_s3 + $0x30] sm:$0xff] %v175_v49 }
  0x3c   :  { %v195_v55 = vadd.f32 %v194_v54, %v188_v53 }
  0x3e   :  { %296 = vst [vmem:[%s421_s3 + $0x38] sm:$0xff] %v195_v55 }
  0x3f   :  { %202 = vsyncpa [#allocation3], 1 }
  0x40   :  { %203 = vsyncpa [#allocation5], 1 }

</bundles_post_ra>
